<compile_context>
chip_gen: v5e
topology: v5e:2x2
jax: 0.10.0
libtpu: 0.0.40
codegen_flags: <defaults>
</compile_context>

<pallas_src>
import functools

import jax
import jax.numpy as jnp
from jax.experimental import pallas as pl
from jax.experimental.pallas import tpu as pltpu

_NEG_PAD = -1e9       # fill for padded logit columns (acts as -inf in softmax)
_IGNORE_INDEX = -100  # PyTorch CrossEntropyLoss default


def _round_up(x, m):
    return (x + m - 1) // m * m


def _cls_classifier_loss_kernel(cls_ref, wt_ref, b_ref, labels_ref,
                                stats_ref, logits_ref):
    # --- dropout (eval mode => identity) + Linear classifier (bf16 MXU, f32 acc) ---
    logits = jnp.dot(cls_ref[...], wt_ref[...],
                     preferred_element_type=jnp.float32) + b_ref[...]   # (TB, Lp) f32
    logits_ref[...] = logits.astype(logits_ref.dtype)                   # lane-dense store

    # --- CrossEntropyLoss ('single_class'), per-tile partial sum + valid count ---
    # Padded columns carry _NEG_PAD bias: never win the max, exp underflows to 0,
    # and real labels (< L) never select them.
    m = jnp.max(logits, axis=-1, keepdims=True)                         # (TB, 1)
    lse = m + jnp.log(jnp.sum(jnp.exp(logits - m), axis=-1, keepdims=True))

    lab = labels_ref[...]                                               # (TB, 1) int32
    col = jax.lax.broadcasted_iota(jnp.int32, logits.shape, 1)          # (TB, Lp)
    picked = jnp.sum(jnp.where(col == lab, logits, 0.0),
                     axis=-1, keepdims=True)                            # (TB, 1)

    valid = lab != _IGNORE_INDEX                                        # (TB, 1) bool
    per_ex = jnp.where(valid, lse - picked, 0.0)                        # (TB, 1)
    loss_sum = jnp.sum(per_ex, axis=0, keepdims=True)                   # (1, 1)
    cnt = jnp.sum(valid.astype(jnp.float32), axis=0, keepdims=True)     # (1, 1)

    # Pack [loss_sum, valid_count, 0, ...] into one lane-dense (1, 128) row.
    lane = jax.lax.broadcasted_iota(jnp.int32, (1, 128), 1)
    stats_ref[...] = jnp.where(lane == 0, loss_sum,
                               jnp.where(lane == 1, cnt, 0.0))


def prepare_classifier_params(weight, bias):
    """One-time parameter prep (hoisted out of the per-call path).

    weight: (L, H), bias: (L,) -> wt_pad: (H, Lp) in weight.dtype, b_pad: (1, Lp) f32.
    """
    L, H = weight.shape
    Lp = _round_up(max(L, 1), 128)
    wt_pad = jnp.pad(weight.T, ((0, 0), (0, Lp - L)))                       # (H, Lp)
    b_pad = jnp.pad(bias.astype(jnp.float32)[None, :],
                    ((0, 0), (0, Lp - L)), constant_values=_NEG_PAD)        # (1, Lp)
    return wt_pad, b_pad


def classification_task_forward(hidden, wt_pad, b_pad, labels, *, num_labels):
    """hidden: (B, S, H) (backbone dtype, e.g. bf16), wt_pad: (H, Lp), b_pad: (1, Lp) f32,
    labels: (B,) int.  Returns (loss scalar f32, logits (B, num_labels) f32) —
    mirroring `return (loss, logits)` for type == 'single_class' (eval-mode dropout).
    """
    B, S, H = hidden.shape
    Lp = wt_pad.shape[1]

    # Batch tiling: TB rows per grid step, weight/bias resident in VMEM.
    TB = min(_round_up(B, 8), 256)
    Bp = _round_up(B, TB)
    NB = Bp // TB

    # CLS rows; the slice is fused into the pallas_call input DMA (allow_input_fusion).
    cls = hidden[:, 0, :]                                      # (B, H), native dtype
    labels2 = labels.astype(jnp.int32).reshape(B, 1)
    if Bp != B:
        cls = jnp.pad(cls, ((0, Bp - B), (0, 0)))
        labels2 = jnp.pad(labels2, ((0, Bp - B), (0, 0)),
                          constant_values=_IGNORE_INDEX)       # padded rows ignored

    stats, logits_pad = pl.pallas_call(
        _cls_classifier_loss_kernel,
        grid=(NB,),
        in_specs=[
            pl.BlockSpec((TB, H), lambda i: (i, 0)),           # CLS tile
            pl.BlockSpec((H, Lp), lambda i: (0, 0)),           # weight: VMEM-resident
            pl.BlockSpec((1, Lp), lambda i: (0, 0)),           # bias:   VMEM-resident
            pl.BlockSpec((TB, 1), lambda i: (i, 0)),           # labels tile
        ],
        out_specs=(
            pl.BlockSpec((None, 1, 128), lambda i: (i, 0, 0)),  # per-tile [sum, cnt]
            pl.BlockSpec((TB, Lp), lambda i: (i, 0)),           # padded logits tile
        ),
        out_shape=(
            jax.ShapeDtypeStruct((NB, 1, 128), jnp.float32),
            jax.ShapeDtypeStruct((Bp, Lp), jnp.float32),
        ),
        compiler_params=pltpu.CompilerParams(
            dimension_semantics=("parallel",),                 # shards over v7x's 2 TCs
            allow_input_fusion=[True, False, False, False],    # fuse CLS slice into DMA
        ),
    )(cls, wt_pad, b_pad, labels2)

    # Final mean reduction outside the (parallel) grid; fuses under jit.
    totals = jnp.sum(stats[:, 0, :2], axis=0)                  # [loss_sum, valid_count]
    loss = totals[0] / jnp.maximum(totals[1], 1.0)
    logits = logits_pad[:B, :num_labels]
    return loss, logits


if __name__ == "__main__":
    # Small, deterministic shapes consistent with the module:
    #   batch B=8, seq S=16, hidden H=128, num_labels L=4, type='single_class'
    B, S, H, L = 8, 16, 128, 4
    key = jax.random.PRNGKey(0)
    k_hidden, k_w, k_b, k_lab = jax.random.split(key, 4)

    # Stand-in for the backbone output `self.model(inputs, segments)` (bf16, native).
    hidden = jax.random.normal(k_hidden, (B, S, H), dtype=jnp.float32).astype(jnp.bfloat16)

    # Deterministic classifier params (nn.Linear(hidden, num_labels)).
    weight = (jax.random.normal(k_w, (L, H), dtype=jnp.float32) * 0.02).astype(jnp.bfloat16)
    bias = jax.random.normal(k_b, (L,), dtype=jnp.float32) * 0.02
    labels = jax.random.randint(k_lab, (B,), 0, L, dtype=jnp.int32)

    # One-time parameter prep (not part of the per-call path).
    wt_pad, b_pad = prepare_classifier_params(weight, bias)

    fwd = jax.jit(functools.partial(classification_task_forward, num_labels=L))
    loss, logits = fwd(hidden, wt_pad, b_pad, labels)
    jax.block_until_ready((loss, logits))

    # Pure-JAX reference check (eval-mode dropout => identity; f32 accumulation).
    C = hidden[:, 0, :]
    ref_logits = jnp.dot(C, weight.T, preferred_element_type=jnp.float32) + bias
    ref_lse = jax.nn.logsumexp(ref_logits, axis=-1)
    ref_picked = jnp.take_along_axis(ref_logits, labels[:, None], axis=-1)[:, 0]
    ref_loss = jnp.mean(ref_lse - ref_picked)

    assert logits.shape == (B, L)
    assert jnp.allclose(logits, ref_logits, atol=2e-3, rtol=2e-3)
    assert jnp.allclose(loss, ref_loss, atol=2e-3, rtol=2e-3)

    print("KERNEL_OK")
</pallas_src>

<mosaic_0001>
module attributes {stable_mosaic.version = 11 : i64} {
  func.func @_cls_classifier_loss_kernel(%arg0: i32, %arg1: memref<8x128xbf16, #tpu.memory_space<vmem>>, %arg2: memref<128x128xbf16, #tpu.memory_space<vmem>>, %arg3: memref<1x128xf32, #tpu.memory_space<vmem>>, %arg4: memref<8x1xi32, #tpu.memory_space<vmem>>, %arg5: memref<1x1x128xf32, #tpu.memory_space<vmem>>, %arg6: memref<8x128xf32, #tpu.memory_space<vmem>>) attributes {dimension_semantics = [#tpu.dimension_semantics<parallel>], iteration_bounds = array<i64: 1>, scalar_prefetch = 0 : i64, scratch_operands = 0 : i64, tpu.core_type = #tpu.core_type<tc>, window_params = [{transform_indices = @transform_0, window_bounds = array<i64: 8, 128>}, {pipeline_mode = #tpu.pipeline_mode<synchronous>, transform_indices = @transform_1, window_bounds = array<i64: 128, 128>}, {pipeline_mode = #tpu.pipeline_mode<synchronous>, transform_indices = @transform_2, window_bounds = array<i64: 1, 128>}, {transform_indices = @transform_3, window_bounds = array<i64: 8, 1>}, {transform_indices = @transform_4, window_bounds = array<i64: 1, 1, 128>}, {transform_indices = @transform_5, window_bounds = array<i64: 8, 128>}]} {
    %c0 = arith.constant 0 : index
    %c0_0 = arith.constant 0 : index
    %0 = vector.load %arg1[%c0, %c0_0] : memref<8x128xbf16, #tpu.memory_space<vmem>>, vector<8x128xbf16>
    %c0_1 = arith.constant 0 : index
    %c0_2 = arith.constant 0 : index
    %1 = vector.load %arg2[%c0_1, %c0_2] : memref<128x128xbf16, #tpu.memory_space<vmem>>, vector<128x128xbf16>
    %cst = arith.constant dense<0.000000e+00> : vector<8x128xf32>
    %2 = tpu.matmul %0, %1, %cst {dimension_numbers = #tpu.dot_dimension_numbers<[1], [0], [0], [1], [0, 0, 1, 1], [], []>} : vector<8x128xbf16>, vector<128x128xbf16>, vector<8x128xf32> -> vector<8x128xf32>
    %c0_3 = arith.constant 0 : index
    %c0_4 = arith.constant 0 : index
    %3 = vector.load %arg3[%c0_3, %c0_4] : memref<1x128xf32, #tpu.memory_space<vmem>>, vector<1x128xf32>
    %4 = vector.broadcast %3 : vector<1x128xf32> to vector<8x128xf32>
    %5 = arith.addf %2, %4 : vector<8x128xf32>
    %c0_5 = arith.constant 0 : index
    %c0_6 = arith.constant 0 : index
    %6 = vector.load %arg6[%c0_5, %c0_6] : memref<8x128xf32, #tpu.memory_space<vmem>>, vector<8x128xf32>
    tpu.vector_store %arg6[%c0_5, %c0_6], %5 {strides = array<i32>} : memref<8x128xf32, #tpu.memory_space<vmem>>, vector<8x128xf32>,
    %cst_7 = arith.constant dense<0xFF800000> : vector<8xf32>
    %7 = vector.multi_reduction <maximumf>, %5, %cst_7 [1] : vector<8x128xf32> to vector<8xf32>
    %8 = vector.shape_cast %7 : vector<8xf32> to vector<8x1xf32>
    %9 = vector.broadcast %8 : vector<8x1xf32> to vector<8x128xf32>
    %10 = arith.subf %5, %9 : vector<8x128xf32>
    %11 = math.exp %10 : vector<8x128xf32>
    %cst_8 = arith.constant dense<0.000000e+00> : vector<8xf32>
    %12 = vector.multi_reduction <add>, %11, %cst_8 [1] : vector<8x128xf32> to vector<8xf32>
    %13 = vector.shape_cast %12 : vector<8xf32> to vector<8x1xf32>
    %14 = math.log %13 : vector<8x1xf32>
    %15 = arith.addf %8, %14 : vector<8x1xf32>
    %c0_9 = arith.constant 0 : index
    %c0_10 = arith.constant 0 : index
    %16 = vector.load %arg4[%c0_9, %c0_10] : memref<8x1xi32, #tpu.memory_space<vmem>>, vector<8x1xi32>
    %17 = tpu.iota {dimensions = array<i32: 1>} : vector<8x128xi32>
    %18 = vector.broadcast %16 : vector<8x1xi32> to vector<8x128xi32>
    %19 = arith.cmpi eq, %17, %18 : vector<8x128xi32>
    %cst_11 = arith.constant 0.000000e+00 : f32
    %20 = vector.broadcast %cst_11 : f32 to vector<8x128xf32>
    %21 = arith.select %19, %5, %20 : vector<8x128xi1>, vector<8x128xf32>
    %cst_12 = arith.constant dense<0.000000e+00> : vector<8xf32>
    %22 = vector.multi_reduction <add>, %21, %cst_12 [1] : vector<8x128xf32> to vector<8xf32>
    %23 = vector.shape_cast %22 : vector<8xf32> to vector<8x1xf32>
    %c-100_i32 = arith.constant -100 : i32
    %24 = vector.broadcast %c-100_i32 : i32 to vector<8x1xi32>
    %25 = arith.cmpi ne, %16, %24 : vector<8x1xi32>
    %26 = arith.subf %15, %23 : vector<8x1xf32>
    %cst_13 = arith.constant 0.000000e+00 : f32
    %27 = vector.broadcast %cst_13 : f32 to vector<8x1xf32>
    %28 = arith.select %25, %26, %27 : vector<8x1xi1>, vector<8x1xf32>
    %cst_14 = arith.constant dense<0.000000e+00> : vector<1xf32>
    %29 = vector.multi_reduction <add>, %28, %cst_14 [0] : vector<8x1xf32> to vector<1xf32>
    %30 = vector.shape_cast %29 : vector<1xf32> to vector<1x1xf32>
    %31 = arith.extui %25 : vector<8x1xi1> to vector<8x1xi32>
    %32 = arith.sitofp %31 : vector<8x1xi32> to vector<8x1xf32>
    %cst_15 = arith.constant dense<0.000000e+00> : vector<1xf32>
    %33 = vector.multi_reduction <add>, %32, %cst_15 [0] : vector<8x1xf32> to vector<1xf32>
    %34 = vector.shape_cast %33 : vector<1xf32> to vector<1x1xf32>
    %35 = tpu.iota {dimensions = array<i32: 1>} : vector<1x128xi32>
    %c0_i32 = arith.constant 0 : i32
    %36 = vector.broadcast %c0_i32 : i32 to vector<1x128xi32>
    %37 = arith.cmpi eq, %35, %36 : vector<1x128xi32>
    %c1_i32 = arith.constant 1 : i32
    %38 = vector.broadcast %c1_i32 : i32 to vector<1x128xi32>
    %39 = arith.cmpi eq, %35, %38 : vector<1x128xi32>
    %cst_16 = arith.constant 0.000000e+00 : f32
    %40 = vector.shape_cast %34 : vector<1x1xf32> to vector<1x1xf32>
    %41 = vector.broadcast %40 : vector<1x1xf32> to vector<1x128xf32>
    %42 = vector.broadcast %cst_16 : f32 to vector<1x128xf32>
    %43 = arith.select %39, %41, %42 : vector<1x128xi1>, vector<1x128xf32>
    %44 = vector.shape_cast %30 : vector<1x1xf32> to vector<1x1xf32>
    %45 = vector.broadcast %44 : vector<1x1xf32> to vector<1x128xf32>
    %46 = arith.select %37, %45, %43 : vector<1x128xi1>, vector<1x128xf32>
    %c0_17 = arith.constant 0 : index
    %c0_18 = arith.constant 0 : index
    %c0_19 = arith.constant 0 : index
    %47 = vector.load %arg5[%c0_17, %c0_18, %c0_19] : memref<1x1x128xf32, #tpu.memory_space<vmem>>, vector<1x1x128xf32>
    %48 = vector.shape_cast %47 : vector<1x1x128xf32> to vector<1x128xf32>
    %49 = vector.shape_cast %46 : vector<1x128xf32> to vector<1x1x128xf32>
    tpu.vector_store %arg5[%c0_17, %c0_18, %c0_19], %49 {strides = array<i32>} : memref<1x1x128xf32, #tpu.memory_space<vmem>>, vector<1x1x128xf32>,
    return
  }
  func.func @transform_0(%arg0: i32) -> (i32, i32) {
    %c0_i32 = arith.constant 0 : i32
    %c0_i32_0 = arith.constant 0 : i32
    return %arg0, %c0_i32 : i32, i32
  }
  func.func @transform_1(%arg0: i32) -> (i32, i32) {
    %c0_i32 = arith.constant 0 : i32
    %c0_i32_0 = arith.constant 0 : i32
    %c0_i32_1 = arith.constant 0 : i32
    return %c0_i32, %c0_i32_0 : i32, i32
  }
  func.func @transform_2(%arg0: i32) -> (i32, i32) {
    %c0_i32 = arith.constant 0 : i32
    %c0_i32_0 = arith.constant 0 : i32
    %c0_i32_1 = arith.constant 0 : i32
    return %c0_i32, %c0_i32_0 : i32, i32
  }
  func.func @transform_3(%arg0: i32) -> (i32, i32) {
    %c0_i32 = arith.constant 0 : i32
    %c0_i32_0 = arith.constant 0 : i32
    return %arg0, %c0_i32 : i32, i32
  }
  func.func @transform_4(%arg0: i32) -> (i32, i32, i32) {
    %c0_i32 = arith.constant 0 : i32
    %c0_i32_0 = arith.constant 0 : i32
    %c0_i32_1 = arith.constant 0 : i32
    return %arg0, %c0_i32, %c0_i32_0 : i32, i32, i32
  }
  func.func @transform_5(%arg0: i32) -> (i32, i32) {
    %c0_i32 = arith.constant 0 : i32
    %c0_i32_0 = arith.constant 0 : i32
    return %arg0, %c0_i32 : i32, i32
  }
}

</mosaic_0001>

<bundles_post_ra>
// kernel: classification_task_forward.2
= control target key start
LH: loop header
LB: loop body
LE: loop exit
PB: predicated region body
PF: predicated region fallthrough
CT: control target
= control target key end

     0   :  { %11 = vsyncpa [#allocation3], 0  ;;  %s273_s21 = smov [#allocation2]   ;;  %s274_s23 = smov 64   ;;  %s330_s0 = inlined_call_operand.hbm [shape: bf16[128,128], index: 0, kind: input, shape index: {}]   ;;  %s331_s1 = inlined_call_operand.vmem [shape: f32[1,128], index: 1, kind: input, shape index: {}]   ;;  %s332_s2 = inlined_call_operand.vmem [shape: s32[8,1], index: 2, kind: input, shape index: {}]   ;;  %s333_s3 = inlined_call_operand.vmem [shape: bf16[8,1,128], index: 3, kind: input, shape index: {}]   ;;  %s334_s4 = inlined_call_operand.vmem [shape: f32[1,1,128], index: 4, kind: output, shape index: {0}]   ;;  %s335_s5 = inlined_call_operand.vmem [shape: f32[8,128], index: 5, kind: output, shape index: {1}]  }
   0x1   :  { %s18_s20 = sshll.u32 %s330_s0, 4  ;;  %s20_s22 = sshll.u32 %s273_s21, 4  ;;  %s19_s20 = int_to_ptr.hbm [resolvable:$true] %s18_s20  ;;  %s21_s22 = int_to_ptr.vmem [resolvable:$true] %s20_s22 }
   0x2   :  { %s275_s24 = smov 4  }
   0x3   :  { %26 = dma.hbm_to_vmem [thread:$0]  %s19_s20, 1024, %s21_s22, [#allocation3], %s274_s23, %s274_s23, %s275_s24  }
   0x4   :  { %271 = dma.done.wait [#allocation3], 1024  }
   0x5   :  { %272 = vsyncadd [#allocation3], 4294966272  ;;  %v234_v0 = vld [vmem:[#allocation2 + $0x38] sm:$0xff]  ;;  %v233_v1 = vld [vmem:[#allocation2 + $0x30] sm:$0xff]  ;;  %v276_v12 = vmov 0   ;;  %v141_v22 = vlaneseq  ;;  %v277_v26 = vmov 0.0  }
   0x6   :  { %116 = vmatpush.bf16.msra.mxu0 %v234_v0  ;;  %v38_v2 = vld [vmem:[%s333_s3] sm:$0xff]  ;;  %v232_v5 = vld [vmem:[#allocation2 + $0x28] sm:$0xff]  ;;  %v230_v7 = vld [vmem:[#allocation2 + $0x18] sm:$0xff]  ;;  %240 = vset.pattern.permute.xlu0 %v276_v12  ;;  %vm153_vm2 = vcmask 7168  }
   0x7   :  { %v39_v3 = vunpack.i.l.bf16 %v38_v2  ;;  %v231_v6 = vld [vmem:[#allocation2 + $0x20] sm:$0xff]  ;;  %v229_v8 = vld [vmem:[#allocation2 + $0x10] sm:$0xff]  ;;  %v228_v9 = vld [vmem:[#allocation2 + $0x8] sm:$0xff]  ;;  %241 = vset.pattern.permute.xlu2 %v276_v12  ;;  %v142_v23 = vand.u32 127, %v141_v22 }
   0x8   :  { %v227_v10 = vld [vmem:[#allocation2] sm:$0xff] }
   0x9   :  { %v43_v4 = vpack.c.bf16 0.0, %v39_v3  ;;  %v242_v13 = vld [vmem:[%s331_s1] ss:$0 sm:$0xff]  ;;  %vm171_vm3 = vcmp.eq.s32.totalorder %v142_v23, 1  ;;  %vm170_vm4 = vcmp.eq.s32.totalorder %v142_v23, 0 }
   0xa   :  { %117 = vmatpush.bf16.msra.mxu0 %v233_v1  ;;  %v140_v17 = vld [vmem:[%s332_s2] sm:$0xff] }
   0xb   :  { %46 = vst [vmem:[#allocation4] sm:$0xf] %v43_v4  ;;  %vm150_vm1 = vcmp.ne.s32.totalorder %v140_v17, 4294967196 }
   0xc   :  { %v226_v27 = vsel %vm150_vm1, 1.0, %v277_v26 }
   0xd   :  { %v163_v28 = vsel %vm153_vm2, %v226_v27, 0.0 }
   0xe   :  { %118 = vmatpush.bf16.msra.mxu0 %v232_v5  ;;  %v164_v29 = vrot.slane %v163_v28, 4 }
  0x10   :  { %v165_v30 = vadd.f32 %v164_v29, %v163_v28 }
  0x12   :  { %119 = vmatpush.bf16.msra.mxu0 %v231_v6  ;;  %v47_v11 = vld [vmem:[#allocation4] sm:$0xf]  ;;  %v166_v31 = vrot.slane %v165_v30, 2 }
  0x14   :  { %v167_v32 = vadd.f32 %v166_v31, %v165_v30 }
  0x16   :  { %120 = vmatpush.bf16.msra.mxu0 %v230_v7  ;;  %v168_v33 = vrot.slane %v167_v32, 1 }
  0x18   :  { %v169_v34 = vadd.f32 %v168_v33, %v167_v32 }
  0x1a   :  { %121 = vmatpush.bf16.msra.mxu0 %v229_v8  ;;  %174 = vperm.xlu2 %241, %v169_v34  }
  0x1e   :  { %122 = vmatpush.bf16.msra.mxu0 %v228_v9 }
  0x22   :  { %123 = vmatpush.bf16.msra.mxu0 %v227_v10 }
  0x25   :  { %124 = vmatmul.bf16.vlgmr.msra.gmra.mxu0 %v47_v11 }
  0x74   :  { %v175_v49 = vpop.permute.xlu2 %174 }
  0x75   :  { %v177_v50 = vsel %vm171_vm3, %v175_v49, 0.0 }
  0xa2   :  { %v125_v14 = vpop.f32.mrf.mxu0 }
  0xa3   :  { %v126_v15 = vadd.f32 %v242_v13, %v125_v14 }
  0xa5   :  { %129 = vst [vmem:[%s335_s5] sm:$0xff] %v126_v15  ;;  %130 = vmax.xlane.f32.xlu0 %v126_v15 }
  0xaa   :  { %v127_v16 = vpop.f32.mrf.mxu0 }
  0xb9   :  { %144 = vperm.xlu0 %240, %v140_v17  }
 0x118   :  { %v131_v18 = vpop.xlane.xlu0 %130 }
 0x119   :  { %v132_v19 = vsub.f32 %v126_v15, %v131_v18 }
 0x11b   :  { %v133_v20 = vmul.f32 1.442695, %v132_v19 }
 0x11d   :  { %243 = vpow2.f32 %v133_v20 }
 0x123   :  { %v244_v21 = vpop.eup %243 }
 0x124   :  { %135 = vadd.xlane.f32.xlu1 %v244_v21 }
 0x12b   :  { %v145_v24 = vpop.permute.xlu0 %144 }
 0x12c   :  { %vm146_vm0 = vcmp.eq.s32.totalorder %v142_v23, %v145_v24 }
 0x12d   :  { %v147_v25 = vsel %vm146_vm0, %v126_v15, 0.0 }
 0x12e   :  { %148 = vadd.xlane.f32.xlu1 %v147_v25 }
 0x197   :  { %v136_v35 = vpop.xlane.xlu1 %135 }
 0x198   :  { %245 = vlog2.f32 %v136_v35 }
 0x19e   :  { %v246_v36 = vpop.eup %245 }
 0x19f   :  { %v138_v37 = vmul.f32 0.6931472, %v246_v36 }
 0x1a1   :  { %v139_v38 = vadd.f32 %v138_v37, %v131_v18  ;;  %v149_v39 = vpop.xlane.xlu1 %148 }
 0x1a3   :  { %v151_v40 = vsub.f32 %v139_v38, %v149_v39 }
 0x1a5   :  { %v152_v41 = vsel %vm150_vm1, %v151_v40, 0.0 }
 0x1a6   :  { %v154_v42 = vsel %vm153_vm2, %v152_v41, 0.0 }
 0x1a7   :  { %v155_v43 = vrot.slane %v154_v42, 4 }
 0x1a9   :  { %v156_v44 = vadd.f32 %v155_v43, %v154_v42 }
 0x1ab   :  { %v157_v45 = vrot.slane %v156_v44, 2 }
 0x1ad   :  { %v158_v46 = vadd.f32 %v157_v45, %v156_v44 }
 0x1af   :  { %v159_v47 = vrot.slane %v158_v46, 1 }
 0x1b1   :  { %v160_v48 = vadd.f32 %v159_v47, %v158_v46 }
 0x1b3   :  { %180 = vperm.xlu2 %241, %v160_v48  }
 0x20d   :  { %v181_v51 = vpop.permute.xlu2 %180 }
 0x20e   :  { %v183_v52 = vsel %vm170_vm4, %v181_v51, %v177_v50 }
 0x20f   :  { %184 = vst [vmem:[%s334_s4] sm:$0x1] %v183_v52 }
 0x210   :  { %193 = vsyncpa [#allocation3], 1 }

</bundles_post_ra>
